<compile_context>
chip_gen: v5e
topology: v5e:2x2
jax: 0.10.0
libtpu: 0.0.40
codegen_flags: <defaults>
</compile_context>

<pallas_src>
import functools

import jax
import jax.numpy as jnp
from jax import lax
from jax.experimental import pallas as pl
from jax.experimental.pallas import tpu as pltpu

NEG_INF = -1e30
# TODO(synk): `NewAttention.forward_one_step` source is not provided; approximated as a
# bilinear ("dot") attention: raw = context . (W h_dec), masked softmax for the attention
# distribution, and penaltied_score = masked_score - PENALTY * prev_attn.
PREV_ATTN_PENALTY = 100.0

MATMUL_DTYPE = jnp.bfloat16   # MXU operand dtype; accumulation & elementwise math stay f32


def _decoder_step_kernel(
        use_gt_ref,                                            # SMEM (T,) int32 (scalar prefetch)
        best_tgt_ref, ctx_ref, mask_ref, last_state_ref,       # inputs
        wcat_ref, b_ref, wattn_ref,
        logit_ref, prob_ref, h_out_ref, c_out_ref,             # outputs
        h_sc, c_sc, dec_sc, pa_sc,                             # VMEM scratch (carry)
        *, H):
    t = pl.program_id(1)

    ctx = ctx_ref[...]                              # (TB, S, E) bf16
    mask = mask_ref[...]                            # (TB, S)    f32
    TB, S, _E = ctx.shape
    lane_iota = lax.broadcasted_iota(jnp.int32, (TB, S), 1)

    @pl.when(t == 0)
    def _init():                                    # reset carry at the start of each batch tile
        h_sc[...] = jnp.zeros_like(h_sc)
        c_sc[...] = jnp.zeros_like(c_sc)
        dec_sc[...] = last_state_ref[...]
        pa_sc[...] = jnp.where(lane_iota == 0, 1.0, 0.0).astype(jnp.float32)  # prev_attn[:,0]=1

    h = h_sc[...]
    c = c_sc[...]
    dec_inp = dec_sc[...]
    prev_attn = pa_sc[...]

    # ---------------- LSTMCell (fused gate matmul, order i,f,g,o) ----------------
    xh = jnp.concatenate([dec_inp, h], axis=1).astype(MATMUL_DTYPE)          # (TB, E+H)
    gates = jnp.dot(xh, wcat_ref[...], preferred_element_type=jnp.float32) + b_ref[...]
    # NOTE: these lane slices are masked extractions when H % 128 != 0; pad H to a
    # multiple of 128 in production for free full-vreg gate views.
    i_g = jax.nn.sigmoid(gates[:, 0:H])
    f_g = jax.nn.sigmoid(gates[:, H:2 * H])
    g_g = jnp.tanh(gates[:, 2 * H:3 * H])
    o_g = jax.nn.sigmoid(gates[:, 3 * H:4 * H])
    c_new = f_g * c + i_g * g_g
    h_new = o_g * jnp.tanh(c_new)
    # dropout: eval-mode semantics -> identity

    # ---------------- attention (bilinear), B*S*E contraction on the MXU ----------------
    proj = jnp.dot(h_new.astype(MATMUL_DTYPE), wattn_ref[...],
                   preferred_element_type=jnp.float32)                        # (TB, E)
    raw = jnp.einsum('bqe,bse->bqs', proj[:, None, :].astype(MATMUL_DTYPE), ctx,
                     preferred_element_type=jnp.float32)[:, 0, :]             # (TB, S)
    masked = jnp.where(mask > 0.0, raw, NEG_INF)
    m = jnp.max(masked, axis=-1, keepdims=True)
    e = jnp.exp(masked - m)
    denom = jnp.sum(e, axis=-1, keepdims=True)
    attn = e * pl.reciprocal(jnp.maximum(denom, 1e-20), approx=True)          # attention distribution
    penalized = masked - prev_attn * PREV_ATTN_PENALTY                        # "penaltied_score"

    # ---------------- topk(1) -> pointer index ----------------
    maxv = jnp.max(penalized, axis=-1, keepdims=True)
    idx = jnp.min(jnp.where(penalized == maxv, lane_iota, S), axis=-1)        # (TB,) int32

    # ---------------- per-step outputs (prob/h/c streamed per t) ----------------
    h_out_ref[0] = h_new                       # decoder_states_h[t]
    c_out_ref[0] = c_new                       # decoder_states_c[t]
    prob_ref[0] = penalized                    # decoder_outputs_prob[t]
    logit_ref[t, :] = idx                      # decoder_outputs_logit[t] (block resident per batch tile)

    # ------- scheduled sampling + ptr_network_index_select (one-hot gather on MXU) -------
    use_gt_t = use_gt_ref[t]                   # scalar int32 from SMEM
    bt = best_tgt_ref[t]                       # (TB,) int32 ground-truth index at step t
    chosen = jnp.where(use_gt_t == 1, bt, idx)
    onehot = (lane_iota == chosen[:, None]).astype(MATMUL_DTYPE)              # (TB, S)
    dec_new = jnp.einsum('bqs,bse->bqe', onehot[:, None, :], ctx,
                         preferred_element_type=jnp.float32)[:, 0, :]         # (TB, E)

    # ------- prev_attn running average -------
    tf = (t + 1).astype(jnp.float32)
    pa_new = (prev_attn * tf + attn) / (tf + 1.0)

    # ---------------- write carry ----------------
    h_sc[...] = h_new
    c_sc[...] = c_new
    dec_sc[...] = dec_new
    pa_sc[...] = pa_new


def init_params(key, E, H):
    """Deterministic init matching torch.nn.LSTMCell / nn.Linear shapes."""
    k = 1.0 / jnp.sqrt(jnp.float32(H))
    keys = jax.random.split(key, 5)
    return dict(
        W_ih=jax.random.uniform(keys[0], (4 * H, E), jnp.float32, -k, k),
        W_hh=jax.random.uniform(keys[1], (4 * H, H), jnp.float32, -k, k),
        b_ih=jax.random.uniform(keys[2], (4 * H,), jnp.float32, -k, k),
        b_hh=jax.random.uniform(keys[3], (4 * H,), jnp.float32, -k, k),
        W_attn=jax.random.uniform(keys[4], (E, H), jnp.float32, -k, k),  # Linear(dec->enc)
    )


def input_feed_rnn_decoder_forward(params, context, context_mask, last_state, tgt,
                                   sampling=0.5, sample_key=None, tile_b=None):
    B, S, E = context.shape
    _, H = last_state.shape
    T = tgt.shape[2]
    assert E == H, "module semantics require dec_input_size == dec_hidden_size"

    # Batch tile: keep it simple (full batch when small; multiple-of-8 tiles otherwise).
    if tile_b is None:
        tile_b = B if (B <= 8 or B % 8 != 0) else 8
    assert B % tile_b == 0
    TB = tile_b
    n_bt = B // TB

    # best_tgt_as_ground_truth = tgt[:,0,:] + (mask.long()-1)*-1  (clamps -1 padding to 0)
    tgt0 = tgt[:, 0, :].astype(jnp.int32)
    gt_mask = (tgt0 >= 0).astype(jnp.int32)
    best_tgt = tgt0 + (gt_mask - 1) * (-1)                 # (B, T)
    best_tgt_tb = best_tgt.T                               # (T, B) for per-step kernel reads

    # Scheduled sampling: the PyTorch module calls python random.random() per step;
    # here the coin flips are precomputed.  random() < sampling -> use ground truth.
    if sample_key is None:
        sample_key = jax.random.PRNGKey(1234)
    u = jax.random.uniform(sample_key, (T,))
    use_gt = (u < sampling).astype(jnp.int32)

    # Weight prep: fused LSTM weight (E+H, 4H); MXU operands in bf16, bias stays f32.
    w_cat = jnp.concatenate([params["W_ih"].T, params["W_hh"].T], axis=0).astype(MATMUL_DTYPE)
    bias = (params["b_ih"] + params["b_hh"]).reshape(1, 4 * H).astype(jnp.float32)
    w_attn_t = params["W_attn"].T.astype(MATMUL_DTYPE)     # (H, E)
    ctx_mm = context.astype(MATMUL_DTYPE)
    mask_f = context_mask.astype(jnp.float32)
    last_state_f = last_state.astype(jnp.float32)

    kernel = functools.partial(_decoder_step_kernel, H=H)

    out_shapes = (
        jax.ShapeDtypeStruct((T, B), jnp.int32),           # decoder_outputs_logit
        jax.ShapeDtypeStruct((T, B, S), jnp.float32),      # decoder_outputs_prob
        jax.ShapeDtypeStruct((T, B, H), jnp.float32),      # decoder_states_h
        jax.ShapeDtypeStruct((T, B, H), jnp.float32),      # decoder_states_c
    )

    in_specs = [
        pl.BlockSpec((T, TB), lambda bb, tt, ug: (0, bb)),           # best_tgt (T,B)
        pl.BlockSpec((TB, S, E), lambda bb, tt, ug: (bb, 0, 0)),     # context (resident over t)
        pl.BlockSpec((TB, S), lambda bb, tt, ug: (bb, 0)),           # context_mask
        pl.BlockSpec((TB, H), lambda bb, tt, ug: (bb, 0)),           # last_state
        pl.BlockSpec((E + H, 4 * H), lambda bb, tt, ug: (0, 0)),     # fused LSTM weight
        pl.BlockSpec((1, 4 * H), lambda bb, tt, ug: (0, 0)),         # bias
        pl.BlockSpec((H, E), lambda bb, tt, ug: (0, 0)),             # attention weight
    ]
    out_specs = (
        pl.BlockSpec((T, TB), lambda bb, tt, ug: (0, bb)),           # logit: resident per batch tile
        pl.BlockSpec((1, TB, S), lambda bb, tt, ug: (tt, bb, 0)),    # prob: streamed per step
        pl.BlockSpec((1, TB, H), lambda bb, tt, ug: (tt, bb, 0)),    # h:    streamed per step
        pl.BlockSpec((1, TB, H), lambda bb, tt, ug: (tt, bb, 0)),    # c:    streamed per step
    )
    scratch_shapes = [
        pltpu.VMEM((TB, H), jnp.float32),   # h carry
        pltpu.VMEM((TB, H), jnp.float32),   # c carry
        pltpu.VMEM((TB, E), jnp.float32),   # decoder_input carry
        pltpu.VMEM((TB, S), jnp.float32),   # prev_attn carry
    ]

    # Explicit scoped-VMEM limit sized to the working set (conservative; safe on v5e/v6e/v7x).
    bpe = jnp.dtype(MATMUL_DTYPE).itemsize
    est = (2 * TB * S * E * bpe                         # context tile (double buffered)
           + (E + H) * 4 * H * bpe + 4 * H * 4 + H * E * bpe   # weights + bias
           + 2 * T * TB * 4                             # best_tgt + logit blocks
           + 2 * TB * S * 4 + 4 * TB * H * 4            # streamed prob / h / c (double buffered)
           + TB * (2 * H + E + S) * 4)                  # scratch carry
    vmem_limit = int(min(32 * 1024 * 1024, max(16 * 1024 * 1024, 2 * est)))

    logit, prob, hs, cs = pl.pallas_call(
        kernel,
        out_shape=out_shapes,
        grid_spec=pltpu.PrefetchScalarGridSpec(
            num_scalar_prefetch=1,
            grid=(n_bt, T),
            in_specs=in_specs,
            out_specs=out_specs,
            scratch_shapes=scratch_shapes),
        compiler_params=pltpu.CompilerParams(
            dimension_semantics=("parallel", "arbitrary"),
            vmem_limit_bytes=vmem_limit),
    )(use_gt, best_tgt_tb, ctx_mm, mask_f, last_state_f, w_cat, bias, w_attn_t)

    return {
        "decoder_outputs_logit": logit,
        "decoder_outputs_prob": prob,
        "best_tgt_as_ground_truth": best_tgt,
        "decoder_states": [hs, cs],
    }


if __name__ == "__main__":
    key = jax.random.PRNGKey(0)
    B, S, T, H = 2, 16, 3, 32
    E = H                      # dec_input_size == dec_hidden_size (required by module semantics)
    n_oracles = 2

    kc, ks, kt, kp = jax.random.split(key, 4)
    context = jax.random.normal(kc, (B, S, E), jnp.float32)
    lengths = jnp.array([12, 16], jnp.int32)
    context_mask = (jnp.arange(S)[None, :] < lengths[:, None]).astype(jnp.float32)
    last_state = jax.random.normal(ks, (B, H), jnp.float32)
    tgt = jax.random.randint(kt, (B, n_oracles, T), -1, S, dtype=jnp.int32)

    params = init_params(kp, E, H)

    out = input_feed_rnn_decoder_forward(params, context, context_mask, last_state, tgt)
    jax.tree_util.tree_map(jax.block_until_ready, out)
    print("KERNEL_OK")
</pallas_src>

<mosaic_0001>
module attributes {stable_mosaic.version = 11 : i64} {
  func.func @_decoder_step_kernel(%arg0: i32, %arg1: i32, %arg2: memref<3xi32, #tpu.memory_space<smem>>, %arg3: memref<3x2xi32, #tpu.memory_space<vmem>>, %arg4: memref<2x16x32xbf16, #tpu.memory_space<vmem>>, %arg5: memref<2x16xf32, #tpu.memory_space<vmem>>, %arg6: memref<2x32xf32, #tpu.memory_space<vmem>>, %arg7: memref<64x128xbf16, #tpu.memory_space<vmem>>, %arg8: memref<1x128xf32, #tpu.memory_space<vmem>>, %arg9: memref<32x32xbf16, #tpu.memory_space<vmem>>, %arg10: memref<3x2xi32, #tpu.memory_space<vmem>>, %arg11: memref<1x2x16xf32, #tpu.memory_space<vmem>>, %arg12: memref<1x2x32xf32, #tpu.memory_space<vmem>>, %arg13: memref<1x2x32xf32, #tpu.memory_space<vmem>>, %arg14: memref<2x32xf32, #tpu.memory_space<vmem>>, %arg15: memref<2x32xf32, #tpu.memory_space<vmem>>, %arg16: memref<2x32xf32, #tpu.memory_space<vmem>>, %arg17: memref<2x16xf32, #tpu.memory_space<vmem>>) attributes {dimension_semantics = [#tpu.dimension_semantics<parallel>, #tpu.dimension_semantics<arbitrary>], iteration_bounds = array<i64: 1, 3>, scalar_prefetch = 1 : i64, scratch_operands = 4 : i64, tpu.core_type = #tpu.core_type<tc>, window_params = [{transform_indices = @transform_0, window_bounds = array<i64: 3, 2>}, {transform_indices = @transform_1, window_bounds = array<i64: 2, 16, 32>}, {transform_indices = @transform_2, window_bounds = array<i64: 2, 16>}, {transform_indices = @transform_3, window_bounds = array<i64: 2, 32>}, {pipeline_mode = #tpu.pipeline_mode<synchronous>, transform_indices = @transform_4, window_bounds = array<i64: 64, 128>}, {pipeline_mode = #tpu.pipeline_mode<synchronous>, transform_indices = @transform_5, window_bounds = array<i64: 1, 128>}, {pipeline_mode = #tpu.pipeline_mode<synchronous>, transform_indices = @transform_6, window_bounds = array<i64: 32, 32>}, {transform_indices = @transform_7, window_bounds = array<i64: 3, 2>}, {transform_indices = @transform_8, window_bounds = array<i64: 1, 2, 16>}, {transform_indices = @transform_9, window_bounds = array<i64: 1, 2, 32>}, {transform_indices = @transform_10, window_bounds = array<i64: 1, 2, 32>}]} {
    %c0 = arith.constant 0 : index
    %c0_0 = arith.constant 0 : index
    %c0_1 = arith.constant 0 : index
    %0 = vector.load %arg4[%c0, %c0_0, %c0_1] : memref<2x16x32xbf16, #tpu.memory_space<vmem>>, vector<2x16x32xbf16>
    %c0_2 = arith.constant 0 : index
    %c0_3 = arith.constant 0 : index
    %1 = vector.load %arg5[%c0_2, %c0_3] : memref<2x16xf32, #tpu.memory_space<vmem>>, vector<2x16xf32>
    %2 = tpu.iota {dimensions = array<i32: 1>} : vector<2x16xi32>
    %c0_i32 = arith.constant 0 : i32
    %3 = arith.cmpi eq, %arg1, %c0_i32 : i32
    %4 = arith.extui %3 : i1 to i32
    %c0_i32_4 = arith.constant 0 : i32
    %5 = arith.cmpi ne, %4, %c0_i32_4 : i32
    scf.if %5 {
      %cst_54 = arith.constant 0.000000e+00 : f32
      %116 = vector.broadcast %cst_54 : f32 to vector<2x32xf32>
      %c0_55 = arith.constant 0 : index
      %c0_56 = arith.constant 0 : index
      %117 = vector.load %arg14[%c0_55, %c0_56] : memref<2x32xf32, #tpu.memory_space<vmem>>, vector<2x32xf32>
      tpu.vector_store %arg14[%c0_55, %c0_56], %116 {strides = array<i32>} : memref<2x32xf32, #tpu.memory_space<vmem>>, vector<2x32xf32>,
      %cst_57 = arith.constant 0.000000e+00 : f32
      %118 = vector.broadcast %cst_57 : f32 to vector<2x32xf32>
      %c0_58 = arith.constant 0 : index
      %c0_59 = arith.constant 0 : index
      %119 = vector.load %arg15[%c0_58, %c0_59] : memref<2x32xf32, #tpu.memory_space<vmem>>, vector<2x32xf32>
      tpu.vector_store %arg15[%c0_58, %c0_59], %118 {strides = array<i32>} : memref<2x32xf32, #tpu.memory_space<vmem>>, vector<2x32xf32>,
      %c0_60 = arith.constant 0 : index
      %c0_61 = arith.constant 0 : index
      %120 = vector.load %arg6[%c0_60, %c0_61] : memref<2x32xf32, #tpu.memory_space<vmem>>, vector<2x32xf32>
      %c0_62 = arith.constant 0 : index
      %c0_63 = arith.constant 0 : index
      %121 = vector.load %arg16[%c0_62, %c0_63] : memref<2x32xf32, #tpu.memory_space<vmem>>, vector<2x32xf32>
      tpu.vector_store %arg16[%c0_62, %c0_63], %120 {strides = array<i32>} : memref<2x32xf32, #tpu.memory_space<vmem>>, vector<2x32xf32>,
      %c0_i32_64 = arith.constant 0 : i32
      %122 = vector.broadcast %c0_i32_64 : i32 to vector<2x16xi32>
      %123 = arith.cmpi eq, %2, %122 : vector<2x16xi32>
      %cst_65 = arith.constant 1.000000e+00 : f32
      %cst_66 = arith.constant 0.000000e+00 : f32
      %124 = vector.broadcast %cst_65 : f32 to vector<2x16xf32>
      %125 = vector.broadcast %cst_66 : f32 to vector<2x16xf32>
      %126 = arith.select %123, %124, %125 : vector<2x16xi1>, vector<2x16xf32>
      %c0_67 = arith.constant 0 : index
      %c0_68 = arith.constant 0 : index
      %127 = vector.load %arg17[%c0_67, %c0_68] : memref<2x16xf32, #tpu.memory_space<vmem>>, vector<2x16xf32>
      tpu.vector_store %arg17[%c0_67, %c0_68], %126 {strides = array<i32>} : memref<2x16xf32, #tpu.memory_space<vmem>>, vector<2x16xf32>,
    } else {
    }
    %c0_5 = arith.constant 0 : index
    %c0_6 = arith.constant 0 : index
    %6 = vector.load %arg14[%c0_5, %c0_6] : memref<2x32xf32, #tpu.memory_space<vmem>>, vector<2x32xf32>
    %c0_7 = arith.constant 0 : index
    %c0_8 = arith.constant 0 : index
    %7 = vector.load %arg15[%c0_7, %c0_8] : memref<2x32xf32, #tpu.memory_space<vmem>>, vector<2x32xf32>
    %c0_9 = arith.constant 0 : index
    %c0_10 = arith.constant 0 : index
    %8 = vector.load %arg16[%c0_9, %c0_10] : memref<2x32xf32, #tpu.memory_space<vmem>>, vector<2x32xf32>
    %c0_11 = arith.constant 0 : index
    %c0_12 = arith.constant 0 : index
    %9 = vector.load %arg17[%c0_11, %c0_12] : memref<2x16xf32, #tpu.memory_space<vmem>>, vector<2x16xf32>
    %10 = tpu.concatenate %8, %6 in 1 : vector<2x32xf32>, vector<2x32xf32> -> vector<2x64xf32>
    %11 = arith.truncf %10 : vector<2x64xf32> to vector<2x64xbf16>
    %c0_13 = arith.constant 0 : index
    %c0_14 = arith.constant 0 : index
    %12 = vector.load %arg7[%c0_13, %c0_14] : memref<64x128xbf16, #tpu.memory_space<vmem>>, vector<64x128xbf16>
    %cst = arith.constant dense<0.000000e+00> : vector<2x128xf32>
    %13 = tpu.matmul %11, %12, %cst {dimension_numbers = #tpu.dot_dimension_numbers<[1], [0], [0], [1], [0, 0, 1, 1], [], []>} : vector<2x64xbf16>, vector<64x128xbf16>, vector<2x128xf32> -> vector<2x128xf32>
    %c0_15 = arith.constant 0 : index
    %c0_16 = arith.constant 0 : index
    %14 = vector.load %arg8[%c0_15, %c0_16] : memref<1x128xf32, #tpu.memory_space<vmem>>, vector<1x128xf32>
    %15 = vector.broadcast %14 : vector<1x128xf32> to vector<2x128xf32>
    %16 = arith.addf %13, %15 : vector<2x128xf32>
    %17 = vector.extract_strided_slice %16 {offsets = [0, 0], sizes = [2, 32], strides = [1, 1]} : vector<2x128xf32> to vector<2x32xf32>
    %18 = arith.negf %17 : vector<2x32xf32>
    %19 = math.exp %18 : vector<2x32xf32>
    %cst_17 = arith.constant 1.000000e+00 : f32
    %20 = vector.broadcast %cst_17 : f32 to vector<2x32xf32>
    %21 = arith.addf %20, %19 : vector<2x32xf32>
    %22 = arith.divf %20, %21 : vector<2x32xf32>
    %23 = vector.extract_strided_slice %16 {offsets = [0, 32], sizes = [2, 32], strides = [1, 1]} : vector<2x128xf32> to vector<2x32xf32>
    %24 = arith.negf %23 : vector<2x32xf32>
    %25 = math.exp %24 : vector<2x32xf32>
    %cst_18 = arith.constant 1.000000e+00 : f32
    %26 = vector.broadcast %cst_18 : f32 to vector<2x32xf32>
    %27 = arith.addf %26, %25 : vector<2x32xf32>
    %28 = arith.divf %26, %27 : vector<2x32xf32>
    %29 = vector.extract_strided_slice %16 {offsets = [0, 64], sizes = [2, 32], strides = [1, 1]} : vector<2x128xf32> to vector<2x32xf32>
    %30 = math.tanh %29 : vector<2x32xf32>
    %31 = vector.extract_strided_slice %16 {offsets = [0, 96], sizes = [2, 32], strides = [1, 1]} : vector<2x128xf32> to vector<2x32xf32>
    %32 = arith.negf %31 : vector<2x32xf32>
    %33 = math.exp %32 : vector<2x32xf32>
    %cst_19 = arith.constant 1.000000e+00 : f32
    %34 = vector.broadcast %cst_19 : f32 to vector<2x32xf32>
    %35 = arith.addf %34, %33 : vector<2x32xf32>
    %36 = arith.divf %34, %35 : vector<2x32xf32>
    %37 = arith.mulf %28, %7 : vector<2x32xf32>
    %38 = arith.mulf %22, %30 : vector<2x32xf32>
    %39 = arith.addf %37, %38 : vector<2x32xf32>
    %40 = math.tanh %39 : vector<2x32xf32>
    %41 = arith.mulf %36, %40 : vector<2x32xf32>
    %42 = arith.truncf %41 : vector<2x32xf32> to vector<2x32xbf16>
    %c0_20 = arith.constant 0 : index
    %c0_21 = arith.constant 0 : index
    %43 = vector.load %arg9[%c0_20, %c0_21] : memref<32x32xbf16, #tpu.memory_space<vmem>>, vector<32x32xbf16>
    %cst_22 = arith.constant dense<0.000000e+00> : vector<2x32xf32>
    %44 = tpu.matmul %42, %43, %cst_22 {dimension_numbers = #tpu.dot_dimension_numbers<[1], [0], [0], [1], [0, 0, 1, 1], [], []>} : vector<2x32xbf16>, vector<32x32xbf16>, vector<2x32xf32> -> vector<2x32xf32>
    %45 = vector.shape_cast %44 : vector<2x32xf32> to vector<2x1x32xf32>
    %46 = arith.truncf %45 : vector<2x1x32xf32> to vector<2x1x32xbf16>
    "tpu.trace_start"() <{level = 10 : i32, message = "bqe,bse->bqs"}> : () -> ()
    %cst_23 = arith.constant dense<0.000000e+00> : vector<2x1x16xf32>
    %47 = tpu.matmul %46, %0, %cst_23 {dimension_numbers = #tpu.dot_dimension_numbers<[2], [2], [1], [1], [0, 0, 0, 1, 1, 1], [0], [0]>} : vector<2x1x32xbf16>, vector<2x16x32xbf16>, vector<2x1x16xf32> -> vector<2x1x16xf32>
    "tpu.trace_stop"() : () -> ()
    %48 = vector.shape_cast %47 : vector<2x1x16xf32> to vector<2x16xf32>
    %cst_24 = arith.constant 0.000000e+00 : f32
    %49 = vector.broadcast %cst_24 : f32 to vector<2x16xf32>
    %50 = arith.cmpf ogt, %1, %49 : vector<2x16xf32>
    %cst_25 = arith.constant -1.000000e+30 : f32
    %51 = vector.broadcast %cst_25 : f32 to vector<2x16xf32>
    %52 = arith.select %50, %48, %51 : vector<2x16xi1>, vector<2x16xf32>
    %cst_26 = arith.constant dense<0xFF800000> : vector<2xf32>
    %53 = vector.multi_reduction <maximumf>, %52, %cst_26 [1] : vector<2x16xf32> to vector<2xf32>
    %54 = vector.shape_cast %53 : vector<2xf32> to vector<2x1xf32>
    %55 = vector.broadcast %54 : vector<2x1xf32> to vector<2x16xf32>
    %56 = arith.subf %52, %55 : vector<2x16xf32>
    %57 = math.exp %56 : vector<2x16xf32>
    %cst_27 = arith.constant dense<0.000000e+00> : vector<2xf32>
    %58 = vector.multi_reduction <add>, %57, %cst_27 [1] : vector<2x16xf32> to vector<2xf32>
    %59 = vector.shape_cast %58 : vector<2xf32> to vector<2x1xf32>
    %cst_28 = arith.constant 9.99999968E-21 : f32
    %60 = vector.broadcast %cst_28 : f32 to vector<2x1xf32>
    %61 = arith.maximumf %59, %60 : vector<2x1xf32>
    %62 = tpu.reciprocal %61 {approx = true} : vector<2x1xf32> -> vector<2x1xf32>
    %63 = vector.broadcast %62 : vector<2x1xf32> to vector<2x16xf32>
    %64 = arith.mulf %57, %63 : vector<2x16xf32>
    %cst_29 = arith.constant 1.000000e+02 : f32
    %65 = vector.broadcast %cst_29 : f32 to vector<2x16xf32>
    %66 = arith.mulf %9, %65 : vector<2x16xf32>
    %67 = arith.subf %52, %66 : vector<2x16xf32>
    %cst_30 = arith.constant dense<0xFF800000> : vector<2xf32>
    %68 = vector.multi_reduction <maximumf>, %67, %cst_30 [1] : vector<2x16xf32> to vector<2xf32>
    %69 = vector.shape_cast %68 : vector<2xf32> to vector<2x1xf32>
    %70 = vector.broadcast %69 : vector<2x1xf32> to vector<2x16xf32>
    %71 = arith.cmpf oeq, %67, %70 : vector<2x16xf32>
    %c16_i32 = arith.constant 16 : i32
    %72 = vector.broadcast %c16_i32 : i32 to vector<2x16xi32>
    %73 = arith.select %71, %2, %72 : vector<2x16xi1>, vector<2x16xi32>
    %cst_31 = arith.constant dense<2147483647> : vector<2xi32>
    %74 = vector.multi_reduction <minsi>, %73, %cst_31 [1] : vector<2x16xi32> to vector<2xi32>
    %c0_32 = arith.constant 0 : index
    %c0_33 = arith.constant 0 : index
    %c0_34 = arith.constant 0 : index
    %75 = vector.load %arg12[%c0_32, %c0_33, %c0_34] : memref<1x2x32xf32, #tpu.memory_space<vmem>>, vector<1x2x32xf32>
    %76 = vector.shape_cast %75 : vector<1x2x32xf32> to vector<2x32xf32>
    %77 = vector.shape_cast %41 : vector<2x32xf32> to vector<1x2x32xf32>
    tpu.vector_store %arg12[%c0_32, %c0_33, %c0_34], %77 {strides = array<i32>} : memref<1x2x32xf32, #tpu.memory_space<vmem>>, vector<1x2x32xf32>,
    %c0_35 = arith.constant 0 : index
    %c0_36 = arith.constant 0 : index
    %c0_37 = arith.constant 0 : index
    %78 = vector.load %arg13[%c0_35, %c0_36, %c0_37] : memref<1x2x32xf32, #tpu.memory_space<vmem>>, vector<1x2x32xf32>
    %79 = vector.shape_cast %78 : vector<1x2x32xf32> to vector<2x32xf32>
    %80 = vector.shape_cast %39 : vector<2x32xf32> to vector<1x2x32xf32>
    tpu.vector_store %arg13[%c0_35, %c0_36, %c0_37], %80 {strides = array<i32>} : memref<1x2x32xf32, #tpu.memory_space<vmem>>, vector<1x2x32xf32>,
    %c0_38 = arith.constant 0 : index
    %c0_39 = arith.constant 0 : index
    %c0_40 = arith.constant 0 : index
    %81 = vector.load %arg11[%c0_38, %c0_39, %c0_40] : memref<1x2x16xf32, #tpu.memory_space<vmem>>, vector<1x2x16xf32>
    %82 = vector.shape_cast %81 : vector<1x2x16xf32> to vector<2x16xf32>
    %83 = vector.shape_cast %67 : vector<2x16xf32> to vector<1x2x16xf32>
    tpu.vector_store %arg11[%c0_38, %c0_39, %c0_40], %83 {strides = array<i32>} : memref<1x2x16xf32, #tpu.memory_space<vmem>>, vector<1x2x16xf32>,
    %84 = arith.index_cast %arg1 : i32 to index
    %c0_41 = arith.constant 0 : index
    %85 = vector.load %arg10[%84, %c0_41] : memref<3x2xi32, #tpu.memory_space<vmem>>, vector<1x2xi32>
    %86 = vector.shape_cast %85 : vector<1x2xi32> to vector<2xi32>
    %87 = vector.shape_cast %74 : vector<2xi32> to vector<1x2xi32>
    tpu.vector_store %arg10[%84, %c0_41], %87 {strides = array<i32>} : memref<3x2xi32, #tpu.memory_space<vmem>>, vector<1x2xi32>,
    %88 = arith.index_cast %arg1 : i32 to index
    %89 = memref.load %arg2[%88] : memref<3xi32, #tpu.memory_space<smem>>
    %90 = arith.index_cast %arg1 : i32 to index
    %c0_42 = arith.constant 0 : index
    %91 = vector.load %arg3[%90, %c0_42] : memref<3x2xi32, #tpu.memory_space<vmem>>, vector<1x2xi32>
    %92 = vector.shape_cast %91 : vector<1x2xi32> to vector<2xi32>
    %c1_i32 = arith.constant 1 : i32
    %93 = arith.cmpi eq, %89, %c1_i32 : i32
    %94 = arith.select %93, %92, %74 : vector<2xi32>
    %95 = vector.shape_cast %94 : vector<2xi32> to vector<2x1xi32>
    %96 = vector.broadcast %95 : vector<2x1xi32> to vector<2x16xi32>
    %97 = arith.cmpi eq, %2, %96 : vector<2x16xi32>
    %98 = arith.extui %97 : vector<2x16xi1> to vector<2x16xi32>
    %99 = arith.sitofp %98 : vector<2x16xi32> to vector<2x16xf32>
    %100 = arith.truncf %99 : vector<2x16xf32> to vector<2x16xbf16>
    %101 = vector.shape_cast %100 : vector<2x16xbf16> to vector<2x1x16xbf16>
    "tpu.trace_start"() <{level = 10 : i32, message = "bqs,bse->bqe"}> : () -> ()
    %cst_43 = arith.constant dense<0.000000e+00> : vector<2x1x32xf32>
    %102 = tpu.matmul %101, %0, %cst_43 {dimension_numbers = #tpu.dot_dimension_numbers<[2], [1], [1], [2], [0, 0, 0, 1, 1, 2], [0], [0]>} : vector<2x1x16xbf16>, vector<2x16x32xbf16>, vector<2x1x32xf32> -> vector<2x1x32xf32>
    "tpu.trace_stop"() : () -> ()
    %103 = vector.shape_cast %102 : vector<2x1x32xf32> to vector<2x32xf32>
    %c1_i32_44 = arith.constant 1 : i32
    %104 = arith.addi %arg1, %c1_i32_44 : i32
    %105 = arith.sitofp %104 : i32 to f32
    %106 = vector.broadcast %105 : f32 to vector<2x16xf32>
    %107 = arith.mulf %9, %106 : vector<2x16xf32>
    %108 = arith.addf %107, %64 : vector<2x16xf32>
    %cst_45 = arith.constant 1.000000e+00 : f32
    %109 = arith.addf %105, %cst_45 : f32
    %110 = vector.broadcast %109 : f32 to vector<2x16xf32>
    %111 = arith.divf %108, %110 : vector<2x16xf32>
    %c0_46 = arith.constant 0 : index
    %c0_47 = arith.constant 0 : index
    %112 = vector.load %arg14[%c0_46, %c0_47] : memref<2x32xf32, #tpu.memory_space<vmem>>, vector<2x32xf32>
    tpu.vector_store %arg14[%c0_46, %c0_47], %41 {strides = array<i32>} : memref<2x32xf32, #tpu.memory_space<vmem>>, vector<2x32xf32>,
    %c0_48 = arith.constant 0 : index
    %c0_49 = arith.constant 0 : index
    %113 = vector.load %arg15[%c0_48, %c0_49] : memref<2x32xf32, #tpu.memory_space<vmem>>, vector<2x32xf32>
    tpu.vector_store %arg15[%c0_48, %c0_49], %39 {strides = array<i32>} : memref<2x32xf32, #tpu.memory_space<vmem>>, vector<2x32xf32>,
    %c0_50 = arith.constant 0 : index
    %c0_51 = arith.constant 0 : index
    %114 = vector.load %arg16[%c0_50, %c0_51] : memref<2x32xf32, #tpu.memory_space<vmem>>, vector<2x32xf32>
    tpu.vector_store %arg16[%c0_50, %c0_51], %103 {strides = array<i32>} : memref<2x32xf32, #tpu.memory_space<vmem>>, vector<2x32xf32>,
    %c0_52 = arith.constant 0 : index
    %c0_53 = arith.constant 0 : index
    %115 = vector.load %arg17[%c0_52, %c0_53] : memref<2x16xf32, #tpu.memory_space<vmem>>, vector<2x16xf32>
    tpu.vector_store %arg17[%c0_52, %c0_53], %111 {strides = array<i32>} : memref<2x16xf32, #tpu.memory_space<vmem>>, vector<2x16xf32>,
    return
  }
  func.func @transform_0(%arg0: i32, %arg1: i32, %arg2: memref<3xi32, #tpu.memory_space<smem>>) -> (i32, i32) {
    %c0_i32 = arith.constant 0 : i32
    %c0_i32_0 = arith.constant 0 : i32
    return %c0_i32, %arg0 : i32, i32
  }
  func.func @transform_1(%arg0: i32, %arg1: i32, %arg2: memref<3xi32, #tpu.memory_space<smem>>) -> (i32, i32, i32) {
    %c0_i32 = arith.constant 0 : i32
    %c0_i32_0 = arith.constant 0 : i32
    %c0_i32_1 = arith.constant 0 : i32
    return %arg0, %c0_i32, %c0_i32_0 : i32, i32, i32
  }
  func.func @transform_2(%arg0: i32, %arg1: i32, %arg2: memref<3xi32, #tpu.memory_space<smem>>) -> (i32, i32) {
    %c0_i32 = arith.constant 0 : i32
    %c0_i32_0 = arith.constant 0 : i32
    return %arg0, %c0_i32 : i32, i32
  }
  func.func @transform_3(%arg0: i32, %arg1: i32, %arg2: memref<3xi32, #tpu.memory_space<smem>>) -> (i32, i32) {
    %c0_i32 = arith.constant 0 : i32
    %c0_i32_0 = arith.constant 0 : i32
    return %arg0, %c0_i32 : i32, i32
  }
  func.func @transform_4(%arg0: i32, %arg1: i32, %arg2: memref<3xi32, #tpu.memory_space<smem>>) -> (i32, i32) {
    %c0_i32 = arith.constant 0 : i32
    %c0_i32_0 = arith.constant 0 : i32
    %c0_i32_1 = arith.constant 0 : i32
    return %c0_i32, %c0_i32_0 : i32, i32
  }
  func.func @transform_5(%arg0: i32, %arg1: i32, %arg2: memref<3xi32, #tpu.memory_space<smem>>) -> (i32, i32) {
    %c0_i32 = arith.constant 0 : i32
    %c0_i32_0 = arith.constant 0 : i32
    %c0_i32_1 = arith.constant 0 : i32
    return %c0_i32, %c0_i32_0 : i32, i32
  }
  func.func @transform_6(%arg0: i32, %arg1: i32, %arg2: memref<3xi32, #tpu.memory_space<smem>>) -> (i32, i32) {
    %c0_i32 = arith.constant 0 : i32
    %c0_i32_0 = arith.constant 0 : i32
    %c0_i32_1 = arith.constant 0 : i32
    return %c0_i32, %c0_i32_0 : i32, i32
  }
  func.func @transform_7(%arg0: i32, %arg1: i32, %arg2: memref<3xi32, #tpu.memory_space<smem>>) -> (i32, i32) {
    %c0_i32 = arith.constant 0 : i32
    %c0_i32_0 = arith.constant 0 : i32
    return %c0_i32, %arg0 : i32, i32
  }
  func.func @transform_8(%arg0: i32, %arg1: i32, %arg2: memref<3xi32, #tpu.memory_space<smem>>) -> (i32, i32, i32) {
    %c0_i32 = arith.constant 0 : i32
    %c0_i32_0 = arith.constant 0 : i32
    return %arg1, %arg0, %c0_i32 : i32, i32, i32
  }
  func.func @transform_9(%arg0: i32, %arg1: i32, %arg2: memref<3xi32, #tpu.memory_space<smem>>) -> (i32, i32, i32) {
    %c0_i32 = arith.constant 0 : i32
    %c0_i32_0 = arith.constant 0 : i32
    return %arg1, %arg0, %c0_i32 : i32, i32, i32
  }
  func.func @transform_10(%arg0: i32, %arg1: i32, %arg2: memref<3xi32, #tpu.memory_space<smem>>) -> (i32, i32, i32) {
    %c0_i32 = arith.constant 0 : i32
    %c0_i32_0 = arith.constant 0 : i32
    return %arg1, %arg0, %c0_i32 : i32, i32, i32
  }
}

</mosaic_0001>

<bundles_post_ra>
// kernel: tpu_custom_call.1
= control target key start
LH: loop header
LB: loop body
LE: loop exit
PB: predicated region body
PF: predicated region fallthrough
CT: control target
= control target key end

     0   :  { %s1610_s20 = smov [#allocation7]   ;;  %s1953_s0 = inlined_call_operand.vmem [shape: s32[3], index: 0, kind: input, shape index: {}]   ;;  %s1954_s1 = inlined_call_operand.vmem [shape: s32[3,2], index: 1, kind: input, shape index: {}]   ;;  %s1955_s2 = inlined_call_operand.hbm [shape: bf16[2,16,32], index: 2, kind: input, shape index: {}]   ;;  %s1956_s3 = inlined_call_operand.vmem [shape: f32[2,16], index: 3, kind: input, shape index: {}]   ;;  %s1957_s4 = inlined_call_operand.vmem [shape: f32[2,32], index: 4, kind: input, shape index: {}]   ;;  %s1958_s5 = inlined_call_operand.hbm [shape: bf16[64,128], index: 5, kind: input, shape index: {}]   ;;  %s1959_s6 = inlined_call_operand.vmem [shape: f32[1,128], index: 6, kind: input, shape index: {}]   ;;  %s1960_s7 = inlined_call_operand.hbm [shape: bf16[32,32], index: 7, kind: input, shape index: {}]   ;;  %s1961_s8 = inlined_call_operand.vmem [shape: s32[3,2], index: 8, kind: output, shape index: {0}]   ;;  %s1962_s9 = inlined_call_operand.hbm [shape: f32[3,2,16], index: 9, kind: output, shape index: {1}]   ;;  %s1963_s10 = inlined_call_operand.hbm [shape: f32[3,2,32], index: 10, kind: output, shape index: {2}]   ;;  %s1964_s11 = inlined_call_operand.hbm [shape: f32[3,2,32], index: 11, kind: output, shape index: {3}]  }
   0x1   :  { %1971 = sst [smem:[#allocation29_spill]] %s1958_s5  ;;  %s18_s19 = sshll.u32 %s1953_s0, 4  ;;  %s19_s19 = int_to_ptr.vmem [resolvable:$true] %s18_s19 }
   0x2   :  { %21 = dma.vmem_to_smem %s19_s19, 16, %s1610_s20, [#allocation6] }
   0x3   :  { %1568 = dma.done.wait [#allocation6], 16 }
   0x4   :  { %1569 = vsyncadd [#allocation6], 4294967280 }
   0x5   :  { %24 = sfence }
   0x6   :  { %25 = vsyncpa [#allocation9], 0 }
   0x7   :  { %26 = vsyncpa [#allocation12], 0 }
   0x8   :  { %27 = vsyncpa [#allocation10], 0 }
   0x9   :  { %29 = vsyncpa [#allocation10 + $0x1], 0 }
   0xa   :  { %30 = vsyncpa [#allocation16], 0 }
   0xb   :  { %32 = vsyncpa [#allocation16 + $0x1], 0  ;;  %s1684_s21 = smov 0   ;;  %s1686_s22 = smov 0  }
   0xc   :  { %s1688_s23 = smov 0   ;;  %s1690_s24 = smov 0  }
   0xd   :  { %s1692_s0 = smov 0   ;;  %s1694_s25 = smov 0  }
   0xe LB: > { %1972 = sst [smem:[#allocation23_spill]] %s1588_s21  ;;  %s1715_s26 = sadd.s32 4294967295, %s1608_s25   ;;  %s1608_s25 = sphi %s1694_s25, %s38_s25   ;;  %s1604_s0 = sphi %s1692_s0, %s1989_s0   ;;  %s1600_s24 = sphi %s1690_s24, %s1988_s24   ;;  %s1596_s23 = sphi %s1688_s23, %s1987_s23   ;;  %s1592_s22 = sphi %s1686_s22, %s1991_s22   ;;  %s1588_s21 = sphi %s1684_s21, %s1990_s21  }
   0xf   : > { %1973 = sst [smem:[#allocation24_spill]] %s1596_s23  ;;  %s1965_s27 = sadd.s32 4294967294, %s1608_s25  }
  0x10   : > { %1974 = sst [smem:[#allocation25_spill]] %s1604_s0  ;;  %s47_s28 = sadd.s32 1, %s1604_s0 }
  0x11   : > { %s252_s29 = sadd.s32 1, %s1596_s23  ;;  %p48_p0 = scmp.ge.s32.totalorder %s47_s28, 3 }
  0x12   : > { %p262_p1 = scmp.ne.s32.totalorder %s1596_s23, %s1592_s22  ;;  %p263_p2 = scmp.eq.s32.totalorder %s1715_s26, 2 }
  0x13   : > { %p268_p3 = scmp.ne.s32.totalorder %s1592_s22, %s1588_s21  ;;  %s1993_s28 = smov (%p48_p0, %s47_s28), 0 }
  0x14   : > { %1975 = sst [smem:[#allocation26_spill]] %s1993_s28  ;;  %p1727_p4 = por %p263_p2, %p262_p1 }
  0x15   : > { %p269_p5 = scmp.eq.s32.totalorder %s1965_s27, 2  ;;  %s247_s12 = ssub.s32 %s1604_s0, %s1993_s28 }
  0x16   : > { %p1164_p6 = scmp.ge.s32.totalorder %s1608_s25, 1  ;;  %p250_p7 = scmp.eq.s32.totalorder %s247_s12, 0 }
  0x17   : > { %p1736_p8 = por %p269_p5, %p268_p3  ;;  %p332_p9 = scmp.lt.s32.totalorder %s1608_s25, 4 }
  0x18   : > { %s1742_s14 = scalar_select %p250_p7, %s1596_s23, %s252_s29  }
  0x19   : > { %s1977_s13 = scalar_select %p1736_p8, 1, 0 }
  0x1a   : > { %1979 = sst [smem:[#allocation28_spill]] %s1742_s14  ;;  %p1744_p10 = pnand %p1164_p6, %p332_p9 }
  0x1b   : > { %1978 = sst [smem:[#allocation27_spill]] %s1977_s13  ;;  %p1275_p11 = scmp.eq.s32.totalorder %s1715_s26, 0 }
  0x1c   : > { %p1255_p12 = pneg %p1744_p10  ;;  %s1981_s5 = sld [smem:[#allocation29_spill]] }
  0x1d   : > { %s1611_s20 = smov [#allocation11]   ;;  %s1612_s12 = smov 64  }
  0x1e   : > { %p1756_p13 = pnand %p1275_p11, %p1255_p12  ;;  %s384_s29 = sshll.u32 %s1611_s20, 4  ;;  %s385_s29 = int_to_ptr.vmem [resolvable:$true] %s384_s29 }
  0x1f   : > { %s1613_s27 = smov 4   ;;  %s354_s16 = sshll.u32 %s1955_s2, 4  ;;  %s355_s16 = int_to_ptr.hbm [resolvable:$true] %s354_s16 }
  0x20   : > { %s1614_s17 = smov [#allocation8]   ;;  %s399_s13 = sshll.u32 %s1960_s7, 4  ;;  %s400_s13 = int_to_ptr.hbm [resolvable:$true] %s399_s13 }
  0x21   : > { %s1615_s20 = smov [#allocation13]  }
  0x22   : > { %s382_s18 = sshll.u32 %s1981_s5, 4  ;;  %s356_s5 = sshll.u32 %s1614_s17, 4  ;;  %s383_s18 = int_to_ptr.hbm [resolvable:$true] %s382_s18  ;;  %s357_s5 = int_to_ptr.vmem [resolvable:$true] %s356_s5 }
  0x23   : > { %1261 = dma.hbm_to_vmem [thread:$0]  (!%p1756_p13), %s383_s18, 512, %s385_s29, [#allocation12], %s1612_s12, %s1612_s12, %s1613_s27  }
  0x24   : > { %1258 = dma.hbm_to_vmem [thread:$0]  (!%p1756_p13), %s355_s16, 256, %s357_s5, [#allocation9], %s1612_s12, %s1612_s12, %s1613_s27  }
  0x25   : > { %s401_s21 = sshll.u32 %s1615_s20, 4  ;;  %417 = sbr.rel (%p1744_p10) target bundleno = 1622 (0x656), region = 48  ;;  %s402_s21 = int_to_ptr.vmem [resolvable:$true] %s401_s21 }
  0x26   : > { %1264 = dma.hbm_to_vmem [thread:$0]  (!%p1756_p13), %s400_s13, 256, %s402_s21, [#allocation12], %s1612_s12, %s1612_s12, %s1613_s27  }
  0x2a   : > { %1571 = dma.done.wait (%p1275_p11), [#allocation9], 256  }
  0x2b   : > { %1573 = vsyncadd (%p1275_p11), [#allocation9], 4294967040 }
  0x2c   : > { %1575 = dma.done.wait (%p1275_p11), [#allocation12], 768  }
  0x2d   : > { %1577 = vsyncadd (%p1275_p11), [#allocation12], 4294966528  ;;  %s470_s5 = sand.u32 1, %s1592_s22   ;;  %v510_v0 = vlaneseq  ;;  %v1790_v2 = vld [vmem:[#allocation8] sm:$0xf]  ;;  %p1178_p0 = scmp.ne.s32.totalorder %s1600_s24, 0 }
  0x2e   : > { %s1785_s21 = sshll.u32 %s470_s5, 1  ;;  %v1792_v3 = vld [vmem:[#allocation8] sm:$0xf0]  ;;  %v1794_v4 = vld [vmem:[#allocation8 + $0x8] sm:$0xf] }
  0x2f   : > { %v1788_v1 = vand.u32 127, %v510_v0  ;;  %v1796_v5 = vld [vmem:[#allocation8 + $0x8] sm:$0xf0]  ;;  %v1801_v6 = vld [vmem:[%s1956_s3] sm:$0x3]  ;;  %s472_s27 = scalar_lea.vmem [#allocation14], %s1785_s21 }
  0x30   : > { %s479_s28 = scalar_lea.vmem [#allocation15], %s1785_s21  ;;  %s486_s13 = scalar_lea.vmem [#allocation17], %s1785_s21 }
  0x31   : > { %515 = sbr.rel (%p1178_p0) target bundleno = 59 (0x3b), region = 64 }
  0x36   : > { %vm516_vm0 = vcmask 254976   ;;  %v519_v7 = vld [vmem:[%s1957_s4] sm:$0x3]  ;;  %vm521_vm1 = vcmp.eq.s32.totalorder %v1788_v1, 0  ;;  %v1616_v8 = vmov 0.0   ;;  %vm523_vm2 = vcmask 123904  }
  0x37   : > { %517 = vst.msk [vmem:[#allocation2] sm:$0x3] %vm516_vm0, %v1616_v8  ;;  %v522_v9 = vsel %vm521_vm1, 1.0, %v1616_v8 }
  0x38   : > { %518 = vst.msk [vmem:[#allocation3] sm:$0x3] %vm516_vm0, %v1616_v8 }
  0x39   : > { %520 = vst.msk [vmem:[#allocation4] sm:$0x3] %vm516_vm0, %v519_v7 }
  0x3a   : > { %524 = vst.msk [vmem:[#allocation5] sm:$0x3] %vm523_vm2, %v522_v9 }
  0x3b PF: > { %v1234_v11 = vld [vmem:[#allocation11 + $0x18] sm:$0xff]  ;;  %s1617_s18 = smov 32   ;;  %v1233_v12 = vld [vmem:[#allocation11 + $0x10] sm:$0xff]  ;;  %v1232_v13 = vld [vmem:[#allocation11 + $0x8] sm:$0xff]  ;;  %vm533_vm3 = vcmask 261120   ;;  %vm572_vm4 = vcmask 523264   ;;  %v1209_v50 = vor.u32 %v1792_v3, %v1790_v2  ;;  %v1214_v51 = vor.u32 %v1796_v5, %v1794_v4  ;;  %s779_s19 = scalar_lea.vmem %s1954_s1, %s1600_s24 }
  0x3c   : > { %580 = vmatpush.bf16.msra.mxu0 %v1234_v11  ;;  %v1231_v14 = vld [vmem:[#allocation11] sm:$0xff]  ;;  %v1343_v20 = vld [vmem:[%s1959_s6] ss:$0 sm:$0xff]  ;;  %s1618_s12 = smov 64   ;;  %vm723_vm9 = vcmask 1041409   ;;  %vm719_vm10 = vcmp.gt.f32.partialorder %v1801_v6, 0.0 }
  0x3d   : > { %v1236_v45 = vld [vmem:[#allocation13 + $0x8] sm:$0xff]  ;;  %v1235_v46 = vld [vmem:[#allocation13] sm:$0xff]  ;;  %v680_v52 = vsel %vm533_vm3, %v1209_v50, 0  ;;  %v704_v53 = vsel %vm533_vm3, %v1214_v51, 0  ;;  %vm727_vm11 = vcmask 123904   ;;  %vm766_vm13 = vcmask 254976  }
  0x3e   : > { %v525_v10 = vld [vmem:[#allocation2] sm:$0x3]  ;;  %659 = vmatpush.bf16.msra.mxu1 %v1236_v45  ;;  %689 = vmatpush.bf16.xpose.msra.mxu2 %v680_v52  ;;  %s1619_s16 = smov 96   ;;  %s845_s17 = sadd.s32 1, %s1600_s24  ;;  %v788_v45 = vshrl.u32 %v510_v0, 7 }
  0x3f   : > { %530 = vrot.lane.b32.xlu0 %v525_v10, %s1617_s18  ;;  %v526_v15 = vld [vmem:[#allocation3] sm:$0x3]  ;;  %713 = vmatpush.bf16.xpose.msra.mxu3 %v704_v53  ;;  %s846_s20 = scvt.s32.f32 %s845_s17  ;;  %s778_s0 = sld [smem:[#allocation7 + %s1600_s24]]  ;;  %v780_v0 = vld [vmem:[%s779_s19] sm:$0x1] }
  0x40   : > { %581 = vmatpush.bf16.msra.mxu0 %v1233_v12  ;;  %610 = vrot.lane.b32.xlu1 %v526_v15, %s1617_s18  ;;  %v527_v16 = vld [vmem:[#allocation4] sm:$0x3]  ;;  %s885_s17 = sand.u32 1, %s1715_s26   ;;  %s922_s15 = sshll.u32 %s479_s28, 4  ;;  %s923_s15 = int_to_ptr.vmem [resolvable:$true] %s922_s15 }
  0x41   : > { %v1831_v61 = vld [vmem:[#allocation5] sm:$0x3]  ;;  %s850_s23 = sadd.f32 1.0, %s846_s20  ;;  %1341 = vset.pattern.permute.xlu2 %v788_v45  ;;  %1342 = vset.pattern.permute.xlu0 %v788_v45  ;;  %s1879_s19 = scalar_lea.sflag [#allocation16], %s885_s17 }
  0x42   : > { %660 = vmatpush.bf16.msra.mxu1 %v1235_v46  ;;  %v740_v2 = vmul.f32 100.0, %v1831_v61 }
  0x44   : > { %582 = vmatpush.bf16.msra.mxu0 %v1232_v13 }
  0x45   : > { %p781_p1 = scmp.eq.s32.totalorder %s778_s0, 1 }
  0x46   : > { %820 = vmatpush.bf16.msrb.mxu1 %v1209_v50  ;;  %839 = vmatpush.bf16.msrb.mxu2 %v1214_v51 }
  0x47   : > { %s782_s14 = scalar_select %p781_p1, 1, 0 }
  0x48   : > { %583 = vmatpush.bf16.msra.mxu0 %v1231_v14 }
  0x49   : > { %v783_v50 = vstv %s782_s14 }
  0xb1   : > { %v531_v17 = vpop.permute.xlu0 %530 }
  0xb2   : > { %v534_v18 = vsel %vm533_vm3, %v527_v16, %v531_v17  ;;  %v611_v40 = vpop.permute.xlu1 %610 }
  0xb3   : > { %v535_v19 = vpack.c.bf16 %v534_v18, %v534_v18 }
  0xb5   : > { %1195 = vmatmul.msk.bf16.vlgmr.msra.gmra.mxu0 %vm572_vm4, %v535_v19  ;;  %vm784_vm4 = vcmp.eq.s32.totalorder %v783_v50, 1 }
 0x132   : > { %v585_v21 = vpop.f32.mrf.mxu0 }
 0x133   : > { %v586_v22 = vadd.f32 %v1343_v20, %v585_v21  ;;  %v851_v21 = vstv %s850_s23 }
 0x134   : > { %vm857_vm15 = vweird.f32 %v851_v21 }
 0x135   : > { %1344 = vtanh.f32 %v586_v22  ;;  %v1196_v25 = vmul.f32 -1.442695, %v586_v22 }
 0x137   : > { %1346 = vpow2.f32 %v1196_v25 }
 0x13a   : > { %v587_v23 = vpop.f32.mrf.mxu0 }
 0x13b   : > { %v1345_v24 = vpop.eup %1344 }
 0x13c   : > { %615 = vrot.lane.b32.xlu0 %v1345_v24, %s1618_s12 }
 0x13d   : > { %v1347_v26 = vpop.eup %1346 }
 0x13e   : > { %v592_v27 = vadd.f32 1.0, %v1347_v26 }
 0x140   : > { %1348 = vrcp.f32 %v592_v27  ;;  %v604_v33 = vand.u32 2147483648, %v592_v27  ;;  %vm598_vm6 = vweird.f32 %v592_v27  ;;  %v602_v34 = vand.u32 2147483647, %v592_v27 }
 0x142   : > { %v605_v36 = vor.u32 1.1754944e-38, %v604_v33  ;;  %vm603_vm8 = vcmp.eq.f32.partialorder %v602_v34, 8.507059e+37  ;;  %v861_v34 = vand.u32 2147483647, %v851_v21 }
 0x144   : > { %vm862_vm2 = vcmp.eq.f32.partialorder %v861_v34, 8.507059e+37 }
 0x146   : > { %v1349_v28 = vpop.eup %1348 }
 0x147   : > { %v594_v29 = vmul.f32 %v1349_v28, %v592_v27  ;;  %vm599_vm5 = vweird.f32 %v1349_v28 }
 0x148   : > { %vm600_vm7 = vmor %vm598_vm6, %vm599_vm5  ;;  %vm799_vm6 = vcmask 1040384  }
 0x149   : > { %v595_v30 = vsub.f32 1.0, %v594_v29 }
 0x14b   : > { %v596_v31 = vmul.f32 %v1349_v28, %v595_v30 }
 0x14d   : > { %v597_v32 = vadd.f32 %v1349_v28, %v596_v31 }
 0x14f   : > { %v601_v35 = vsel %vm600_vm7, %v1349_v28, %v597_v32  ;;  %v863_v32 = vand.u32 2147483648, %v851_v21  ;;  %vm809_vm7 = vcmask 130048  }
 0x150   : > { %v606_v37 = vsel %vm603_vm8, %v605_v36, %v601_v35  ;;  %v847_v35 = vstv %s846_s20  ;;  %s1871_s20 = sshll.u32 %s1600_s24, 1 }
 0x151   : > { %v613_v41 = vmul.f32 %v611_v40, %v606_v37  ;;  %v864_v36 = vor.u32 1.1754944e-38, %v863_v32  ;;  %s920_s14 = scalar_lea.hbm %s1963_s10, %s1871_s20 }
 0x1ae   : > { %v616_v38 = vpop.permute.xlu0 %615 }
 0x1af   : > { %v618_v39 = vmul.f32 %v616_v38, %v606_v37 }
 0x1b1   : > { %620 = vrot.lane.b32.xlu1 %v618_v39, %s1617_s18 }
 0x223   : > { %v621_v42 = vpop.permute.xlu1 %620 }
 0x224   : > { %v1818_v43 = vadd.f32 %v621_v42, %v613_v41 }
 0x226   : > { %1350 = vtanh.f32 %v1818_v43 }
 0x22c   : > { %v1351_v44 = vpop.eup %1350 }
 0x22d   : > { %626 = vrot.lane.b32.xlu2 %v1351_v44, %s1618_s12 }
 0x287   : > { %v627_v47 = vpop.permute.xlu2 %626 }
 0x288   : > { %v629_v48 = vmul.f32 %v627_v47, %v606_v37  ;;  %v848_v37 = vmul.f32 %v847_v35, %v1831_v61 }
 0x28a   : > { %v630_v49 = vpack.c.bf16 %v629_v48, %v629_v48 }
 0x28c   : > { %636 = vrot.lane.b32.xlu2 %v630_v49, %s1617_s18 }
 0x2e6   : > { %v637_v54 = vpop.permute.xlu2 %636 }
 0x2e7   : > { %1205 = vmatmul.msk.bf16.vlgmr.msra.gmra.mxu1 %vm533_vm3, %v637_v54 }
 0x364   : > { %v662_v55 = vpop.f32.mrf.mxu1 }
 0x365   : > { %v667_v56 = vrot.slane %v662_v55, 1  ;;  %v669_v57 = vpack.c.bf16 %v662_v55, %v662_v55 }
 0x367   : > { %v670_v58 = vpack.c.bf16 %v667_v56, %v667_v56  ;;  %1210 = vmatmul.msk.bf16.vlgmr.msra.gmra.mxu2 %vm533_vm3, %v669_v57  ;;  %v1620_v56 = vmov 0.0  }
 0x369   : > { %1215 = vmatmul.msk.bf16.vlgmr.msra.gmra.mxu3 %vm533_vm3, %v670_v58  ;;  %vm776_vm3 = vcmask 8192  }
 0x36c   : > { %v664_v59 = vpop.f32.mrf.mxu1 }
 0x3ea   : > { %v691_v60 = vpop.f32.mrf.mxu2 }
 0x3ec   : > { %v715_v62 = vpop.f32.mrf.mxu3 }
 0x3ed   : > { %v722_v63 = vrot.slane %v715_v62, 7 }
 0x3ef   : > { %v724_v3 = vsel %vm723_vm9, %v722_v63, %v691_v60 }
 0x3f0   : > { %v726_v4 = vsel %vm719_vm10, %v724_v3, -1e+30 }
 0x3f1   : > { %v741_v5 = vsub.f32 %v726_v4, %v740_v2  ;;  %v728_v10 = vsel %vm727_vm11, %v726_v4, -inf }
 0x3f2   : > { %v693_v7 = vpop.f32.mrf.mxu2 }
 0x3f3   : > { %v742_v8 = vsel %vm727_vm11, %v741_v5, -inf  ;;  %773 = vst.msk [vmem:[%s472_s27] sm:$0x3] %vm727_vm11, %v741_v5 }
 0x3f4   : > { %743 = vmax.xlane.f32.xlu0 %v742_v8  ;;  %v717_v9 = vpop.f32.mrf.mxu3 }
 0x3fc   : > { %729 = vmax.xlane.f32.xlu0 %v728_v10 }
 0x410   : > { %763 = vrot.lane.b32.xlu0 %v629_v48, %s1617_s18  ;;  %s924_s18 = sshll.u32 %s920_s14, 4  ;;  %s925_s18 = int_to_ptr.hbm [resolvable:$true] %s924_s18 }
 0x411   : > { %s1474_s29 = sshra.s32 %s925_s18, 4  ;;  %s1475_s29 = int_to_ptr.hbm [resolvable:$true] %s1474_s29 }
 0x412   : > { %s1476_s12 = scalar_lea.hbm %s1475_s29, 2  ;;  %p1481_p6 = scmp.lt.s32.totalorder %s1475_s29, %s1963_s10 }
 0x413   : > { %p1477_p2 = scmp.ne.s32.totalorder %s1475_s29, %s1476_s12 }
 0x415   : > { %p1478_p3 = pnand %p1477_p2, %p1727_p4 }
 0x417   : > { %p1479_p5 = pneg %p1478_p3 }
 0x467   : > { %v744_v6 = vpop.xlane.xlu0 %743 }
 0x468   : > { %vm745_vm12 = vcmp.eq.f32.partialorder %v741_v5, %v744_v6 }
 0x469   : > { %v746_v11 = vsel %vm745_vm12, %v1788_v1, 16 }
 0x46a   : > { %v747_v12 = vsel %vm727_vm11, %v746_v11, 2147483647 }
 0x46b   : > { %v749_v13 = vshra.s32 %v747_v12, 16  ;;  %v748_v22 = vand.u32 65535, %v747_v12 }
 0x46d   : > { %v751_v14 = vcvt.s32.f32 %v749_v13  ;;  %v750_v24 = vcvt.s32.f32 %v748_v22 }
 0x46f   : > { %752 = vmin.xlane.f32.xlu1 %v751_v14  ;;  %v730_v15 = vpop.xlane.xlu0 %729 }
 0x470   : > { %v731_v16 = vsub.f32 %v726_v4, %v730_v15 }
 0x472   : > { %v732_v17 = vmul.f32 1.442695, %v731_v16 }
 0x474   : > { %1352 = vpow2.f32 %v732_v17 }
 0x475   : > { %1354 = vrcp.f32 %v851_v21 }
 0x47a   : > { %v1353_v18 = vpop.eup %1352 }
 0x47b   : > { %v734_v19 = vsel %vm727_vm11, %v1353_v18, 0.0  ;;  %v1355_v25 = vpop.eup %1354 }
 0x47c   : > { %735 = vadd.xlane.f32.xlu1 %v734_v19  ;;  %v853_v27 = vmul.f32 %v1355_v25, %v851_v21  ;;  %vm858_vm0 = vweird.f32 %v1355_v25 }
 0x47d   : > { %vm859_vm1 = vmor %vm857_vm15, %vm858_vm0 }
 0x47e   : > { %v854_v28 = vsub.f32 1.0, %v853_v27 }
 0x480   : > { %v855_v29 = vmul.f32 %v1355_v25, %v854_v28 }
 0x482   : > { %v764_v20 = vpop.permute.xlu0 %763  ;;  %v856_v33 = vadd.f32 %v1355_v25, %v855_v29 }
 0x483   : > { %767 = vst.msk [vmem:[%s479_s28] sm:$0x3] %vm766_vm13, %v764_v20 }
 0x484   : > { %867 = vst.msk [vmem:[#allocation2] sm:$0x3] %vm766_vm13, %v764_v20  ;;  %v860_v38 = vsel %vm859_vm1, %v1355_v25, %v856_v33 }
 0x485   : > { %v865_v41 = vsel %vm862_vm2, %v864_v36, %v860_v38 }
 0x495   : > { %769 = vrot.lane.b32.xlu1 %v1818_v43, %s1619_s16  ;;  %s775_s16 = scalar_lea.vmem %s1961_s8, %s1600_s24 }
 0x4e2   : > { %v753_v23 = vpop.xlane.xlu1 %752 }
 0x4e3   : > { %vm754_vm14 = vcmp.eq.f32.partialorder %v751_v14, %v753_v23  ;;  %v759_v46 = vcvt.f32.s32 %v753_v23 }
 0x4e4   : > { %v755_v26 = vsel %vm754_vm14, %v750_v24, inf }
 0x4e5   : > { %756 = vmin.xlane.f32.xlu2 %v755_v26  ;;  %v760_v48 = vshll.u32 %v759_v46, 16 }
 0x4ef   : > { %v736_v30 = vpop.xlane.xlu1 %735 }
 0x4f0   : > { %v737_v31 = vmax.f32 %v736_v30, 1e-20 }
 0x4f2   : > { %1356 = vrcp.f32 %v737_v31 }
 0x4f8   : > { %v1357_v39 = vpop.eup %1356 }
 0x4f9   : > { %v739_v40 = vmul.f32 %v1357_v39, %v1353_v18 }
 0x4fb   : > { %v849_v42 = vadd.f32 %v848_v37, %v739_v40 }
 0x4fd   : > { %v866_v43 = vmul.f32 %v865_v41, %v849_v42 }
 0x4ff   : > { %875 = vst.msk [vmem:[#allocation5] sm:$0x3] %vm727_vm11, %v866_v43 }
 0x507   : > { %v770_v44 = vpop.permute.xlu1 %769 }
 0x508   : > { %772 = vst.msk [vmem:[%s486_s13] sm:$0x3] %vm766_vm13, %v770_v44 }
 0x509   : > { %868 = vst.msk [vmem:[#allocation3] sm:$0x3] %vm766_vm13, %v770_v44 }
 0x558   : > { %v757_v47 = vpop.xlane.xlu2 %756 }
 0x559   : > { %v758_v49 = vcvt.f32.s32 %v757_v47 }
 0x55b   : > { %v761_v51 = vadd.s32 %v760_v48, %v758_v49 }
 0x55d   : > { %v774_v52 = vperm.slane %v761_v51, %v1788_v1 }
 0x55f   : > { %777 = vst.msk [vmem:[%s775_s16] sm:$0x1] %vm776_vm3, %v774_v52  ;;  %v785_v53 = vsel %vm784_vm4, %v780_v0, %v774_v52  ;;  %s1480_s16 = scalar_lea.hbm %s1963_s10, 6 }
 0x560   : > { %v786_v54 = vperm.slane %v785_v53, 0  ;;  %p1482_p7 = scmp.lt.s32.totalorder %s1480_s16, %s1476_s12 }
 0x562   : > { %791 = vperm.xlu2 %1341, %v786_v54   ;;  %p1483_p9 = por %p1482_p7, %p1481_p6 }
 0x564   : > { %p1484_p10 = pnand %p1483_p9, %p1479_p5 }
 0x5bc   : > { %v792_v55 = vpop.permute.xlu2 %791 }
 0x5bd   : > { %vm793_vm5 = vcmp.eq.s32.totalorder %v1788_v1, %v792_v55 }
 0x5be   : > { %v1216_v57 = vsel %vm793_vm5, 1.0, %v1620_v56 }
 0x5bf   : > { %v796_v58 = vpack.c.bf16 %v1216_v57, %v1216_v57 }
 0x5c1   : > { %v798_v59 = vrot.slane %v796_v58, 3 }
 0x5c3   : > { %v802_v60 = vsel %vm799_vm6, %v796_v58, %v798_v59 }
 0x5c4   : > { %v805_v61 = vunpack.i.h.s16 %v802_v60  ;;  %v1217_v62 = vpack.i.b16 %v802_v60, %v802_v60 }
 0x5c6   : > { %v807_v63 = vperm.slane %v1217_v62, 0  ;;  %v826_v2 = vpack.i.b16 %v805_v61, %v805_v61 }
 0x5c8   : > { %1218 = vmatmul.msk.bf16.vlgmr.msrb.gmra.mxu1 %vm809_vm7, %v807_v63  ;;  %v827_v3 = vperm.slane %v826_v2, 0 }
 0x5ca   : > { %1219 = vmatmul.msk.bf16.vlgmr.msrb.gmra.mxu2 %vm809_vm7, %v827_v3 }
 0x5cb   : > { %1487 = shalt.err (!%p1484_p10)
}
 0x5cc   : > { %1250 = dma.vmem_to_hbm [thread:$0]  (%p1727_p4), %s923_s15, 32, %s925_s18, %s1879_s19  }
 0x5cd   : > { %s905_s14 = scalar_lea.hbm %s1962_s9, %s1871_s20  ;;  %s907_s24 = sshll.u32 %s472_s27, 4  ;;  %s908_s24 = int_to_ptr.vmem [resolvable:$true] %s907_s24 }
 0x5ce   : > { %s909_s26 = sshll.u32 %s905_s14, 4  ;;  %s881_s29 = scalar_lea.sflag [#allocation10], %s470_s5  ;;  %s910_s26 = int_to_ptr.hbm [resolvable:$true] %s909_s26 }
 0x5cf   : > { %s1502_s12 = sshra.s32 %s910_s26, 4  ;;  %s1508_s18 = scalar_lea.hbm %s1962_s9, 6  ;;  %s1503_s12 = int_to_ptr.hbm [resolvable:$true] %s1502_s12 }
 0x5d0   : > { %s1504_s16 = scalar_lea.hbm %s1503_s12, 2  ;;  %p1509_p0 = scmp.lt.s32.totalorder %s1503_s12, %s1962_s9 }
 0x5d1   : > { %p1505_p11 = scmp.ne.s32.totalorder %s1503_s12, %s1504_s16  ;;  %p1510_p1 = scmp.lt.s32.totalorder %s1508_s18, %s1504_s16 }
 0x5d3   : > { %p1506_p12 = pnand %p1505_p11, %p1727_p4  ;;  %p1511_p2 = por %p1510_p1, %p1509_p0 }
 0x5d5   : > { %p1507_p13 = pneg %p1506_p12 }
 0x5d7   : > { %p1512_p3 = pnand %p1511_p2, %p1507_p13 }
 0x5d9   : > { %1515 = shalt.err (!%p1512_p3)
}
 0x5da   : > { %1249 = dma.vmem_to_hbm [thread:$0]  (%p1727_p4), %s908_s24, 32, %s910_s26, %s881_s29  }
 0x5db   : > { %s935_s17 = scalar_lea.hbm %s1964_s11, %s1871_s20  ;;  %s937_s14 = sshll.u32 %s486_s13, 4  ;;  %s938_s14 = int_to_ptr.vmem [resolvable:$true] %s937_s14 }
 0x5dc   : > { %s939_s23 = sshll.u32 %s935_s17, 4  ;;  %s1536_s24 = scalar_lea.hbm %s1964_s11, 6  ;;  %s940_s23 = int_to_ptr.hbm [resolvable:$true] %s939_s23 }
 0x5dd   : > { %s1530_s12 = sshra.s32 %s940_s23, 4  ;;  %s1531_s12 = int_to_ptr.hbm [resolvable:$true] %s1530_s12 }
 0x5de   : > { %s1532_s16 = scalar_lea.hbm %s1531_s12, 2  ;;  %p1537_p9 = scmp.lt.s32.totalorder %s1531_s12, %s1964_s11 }
 0x5df   : > { %p1533_p5 = scmp.ne.s32.totalorder %s1531_s12, %s1532_s16  ;;  %p1538_p10 = scmp.lt.s32.totalorder %s1536_s24, %s1532_s16 }
 0x5e1   : > { %p1534_p6 = pnand %p1533_p5, %p1727_p4  ;;  %p1539_p11 = por %p1538_p10, %p1537_p9 }
 0x5e3   : > { %p1535_p7 = pneg %p1534_p6 }
 0x5e5   : > { %p1540_p12 = pnand %p1539_p11, %p1535_p7 }
 0x5e7   : > { %1543 = shalt.err (!%p1540_p12)
}
 0x5e8   : > { %1251 = dma.vmem_to_hbm [thread:$0]  (%p1727_p4), %s938_s14, 32, %s940_s23, %s1879_s19  }
 0x645   : > { %v822_v1 = vpop.f32.mrf.mxu1 }
 0x64d   : > { %v824_v4 = vpop.f32.mrf.mxu1  ;;  %v841_v5 = vpop.f32.mrf.mxu2 }
 0x64e   : > { %v871_v7 = vrot.slane %v841_v5, 7 }
 0x650   : > { %v872_v8 = vsel %vm723_vm9, %v871_v7, %v822_v1 }
 0x651   : > { %874 = vst.msk [vmem:[#allocation4] sm:$0x3] %vm766_vm13, %v872_v8 }
 0x655   : > { %v843_v9 = vpop.f32.mrf.mxu2 }
 0x656 PF: > { %s1983_s21 = sld [smem:[#allocation23_spill]]  ;;  %p1281_p13 = scmp.ge.s32.totalorder %s1608_s25, 2 }
 0x658   : > { %p1266_p0 = pnand %p1281_p13, %p1736_p8 }
 0x65a   : > { %p1267_p1 = pneg %p1266_p0 }
 0x65c   : > { %s958_s20 = sand.u32 1, %s1983_s21  }
 0x65d   : > { %s959_s30 = scalar_lea.sflag [#allocation10], %s958_s20 }
 0x65e   : > { %1579 = dma.done.wait (%p1267_p1), %s959_s30, 32  }
 0x65f   : > { %1581 = vsyncadd (%p1267_p1), %s959_s30, 4294967264  ;;  %s1985_s19 = sadd.s32 4294967294, %s1608_s25  }
 0x660   : > { %s968_s0 = sand.u32 1, %s1985_s19  }
 0x661   : > { %s969_s28 = scalar_lea.sflag [#allocation16], %s968_s0 }
 0x662   : > { %1583 = dma.done.wait (%p1267_p1), %s969_s28, 64  }
 0x663   : > { %1585 = vsyncadd (%p1267_p1), %s969_s28, 4294967232  ;;  %s38_s25 = sadd.s32 1, %s1608_s25   ;;  %s1986_s5 = sld [smem:[#allocation24_spill]] }
 0x664   : > { %p35_p4 = scmp.ge.s32.totalorder %s38_s25, 5   ;;  %s1987_s23 = sld [smem:[#allocation28_spill]] }
 0x665   : > { %s1988_s24 = sld [smem:[#allocation25_spill]]  ;;  %s1990_s21 = smov %s1592_s22 }
 0x666   : > { %s1989_s0 = sld [smem:[#allocation26_spill]]  ;;  %37 = sbr.rel (!%p35_p4) target bundleno = 14 (0xe), region = 153 }
 0x669   : > { %s1991_s22 = smov %s1986_s5 }
 0x66b   :  { %985 = vsyncpa [#allocation9], 1 }
 0x66c   :  { %987 = vsyncpa [#allocation9 + $0x1], 1 }
 0x66d   :  { %988 = vsyncpa [#allocation12], 1 }
 0x66e   :  { %989 = vsyncpa [#allocation10], 1 }
 0x66f   :  { %991 = vsyncpa [#allocation10 + $0x1], 1 }
 0x670   :  { %992 = vsyncpa [#allocation16], 1 }
 0x671   :  { %994 = vsyncpa [#allocation16 + $0x1], 1 }

</bundles_post_ra>
